<compile_context>
chip_gen: v5e
topology: v5e:2x2
jax: 0.10.0
libtpu: 0.0.40
codegen_flags: <defaults>
</compile_context>

<pallas_src>
import functools

import jax
import jax.numpy as jnp
from jax import lax
from jax.experimental import pallas as pl
from jax.experimental.pallas import tpu as pltpu


def _pick_row_tile(n, cap=512):
    """Largest row tile <= cap that keeps block shapes TPU-legal."""
    if n <= cap:
        return n                      # single full tile
    for tm in range(cap, 0, -128):    # lane-/sublane-friendly tiles
        if tm % 128 == 0 and n % tm == 0:
            return tm
    return n                          # fallback: one full tile


def _supcon_kernel(wb_ref, q_ref, k_ref, loss_ref, pred_ref, *,
                   batch_size, count, block_m):
    w = wb_ref[0, 0]
    b = wb_ref[0, 1]
    tm, d = q_ref.shape
    n = k_ref.shape[0]

    xq = q_ref[...].astype(jnp.float32)            # (TM, D) query rows of this tile
    xk = k_ref[...].astype(jnp.float32)            # (N, D) all rows

    # Row pre-normalization: gram of normalized rows == cosine matrix.
    # NOTE: eps is applied per-row (like torch F.cosine_similarity's clamp);
    # differs from max(||xi||*||xj||, eps) only for near-zero-norm rows.
    qn = xq * lax.rsqrt(jnp.maximum(jnp.sum(xq * xq, axis=-1, keepdims=True), 1e-16))
    kn = xk * lax.rsqrt(jnp.maximum(jnp.sum(xk * xk, axis=-1, keepdims=True), 1e-16))

    # MXU gram; transpose expressed via contraction dims (no materialized x.T).
    cos = lax.dot_general(qn, kn, (((1,), (1,)), ((), ())),
                          preferred_element_type=jnp.float32)       # (TM, N)

    # NOTE: torch.clamp(self.w, 1e-6) in the reference is a no-op (result unused).
    s = cos * w + b                                                  # dot_feature
    smax = jnp.max(s, axis=1, keepdims=True)                         # incl. diag
    l = s - smax                                                     # shifted logits
    e = jnp.exp(l)

    # Analytic diagonal: cos(x_i, x_i) == 1  =>  dot_feature_ii == w + b.
    diag_l = (w + b) - smax                                          # (TM, 1)

    # log-sum-exp over j != i, diagonal removed analytically (no (N,N) mask).
    S = jnp.sum(e, axis=1, keepdims=True) - jnp.exp(diag_l)          # (TM, 1)

    # Same-sample mask from 1-D modded iotas (includes the diagonal; the
    # diagonal's contribution is removed analytically below).
    row0 = pl.program_id(0) * block_m
    gr = row0 + lax.broadcasted_iota(jnp.int32, (tm, 1), 0)          # global row ids
    gc = lax.broadcasted_iota(jnp.int32, (1, n), 1)                  # col ids
    same = (gr % batch_size) == (gc % batch_size)                    # (TM, N)

    same_sum = jnp.sum(jnp.where(same, l, 0.0), axis=1, keepdims=True)
    pos_sum = same_sum - diag_l                                      # drop diag term
    inv_pos = jnp.float32(1.0 / (count - 1))                         # exact #positives
    row_loss = jnp.log(S) - pos_sum * inv_pos                        # (TM, 1)
    loss_ref[0, :] = row_loss[:, 0]                                  # lane-dense store

    # Top-1 prediction over j != i (argmax is invariant to the row shift).
    nd = jnp.where(gr == gc, jnp.float32(-jnp.inf), l)
    nd_max = jnp.max(nd, axis=1, keepdims=True)
    pred = jnp.min(jnp.where(nd == nd_max, gc, n), axis=1)           # first max col
    pred_ref[0, :] = pred.astype(jnp.int32)


def loss_function_forward(features, init_w=10.0, init_b=-5.0):
    """JAX/Pallas equivalent of LossFunction.forward.

    features: (batch_size, count, D) float32
    returns: (loss scalar, prec1 scalar) as in the torch module.
    """
    B, count, D = features.shape
    assert count >= 2, "supervised-contrastive loss needs count >= 2 views"
    N = B * count

    # torch.cat(torch.unbind(features, dim=1), dim=0)  (view-major rows)
    feature = jnp.transpose(features, (1, 0, 2)).reshape(N, D).astype(jnp.float32)
    wb = jnp.array([[init_w, init_b]], dtype=jnp.float32)

    tm = _pick_row_tile(N)
    grid = (N // tm,)

    # Advisory cost estimate for XLA scheduling around the custom call.
    cost = pl.CostEstimate(
        flops=int(2 * N * N * D + 12 * N * N),
        transcendentals=int(N * N + 3 * N),
        bytes_accessed=int(2 * N * D * 4 + 2 * N * 4),
    )
    # Rough per-step VMEM footprint (f32 temporaries + key block), with
    # double-buffer headroom; clamped so it is legal on v5e/v6e/v7x.
    vmem_est = 4 * (6 * tm * N + 2 * N * D + 2 * tm * D) * 2
    vmem_limit = int(min(64 * 1024 * 1024, max(32 * 1024 * 1024, vmem_est)))

    row_loss, pred = pl.pallas_call(
        functools.partial(_supcon_kernel, batch_size=B, count=count, block_m=tm),
        grid=grid,
        out_shape=(
            jax.ShapeDtypeStruct((1, N), jnp.float32),   # per-row loss (lane-dense)
            jax.ShapeDtypeStruct((1, N), jnp.int32),     # per-row top-1 index
        ),
        in_specs=[
            pl.BlockSpec(memory_space=pltpu.MemorySpace.SMEM),      # (1,2) [w, b]
            pl.BlockSpec((tm, D), lambda i: (i, 0)),                # query row tile
            pl.BlockSpec((N, D), lambda i: (0, 0)),                 # full key block
        ],
        out_specs=(
            pl.BlockSpec((1, tm), lambda i: (0, i)),
            pl.BlockSpec((1, tm), lambda i: (0, i)),
        ),
        compiler_params=pltpu.CompilerParams(
            dimension_semantics=("parallel",),          # rows split across TCs (v7x)
            vmem_limit_bytes=vmem_limit,
        ),
        cost_estimate=cost,
    )(wb, feature, feature)

    # loss.view(count, batch_size).mean() == plain mean over the N per-row losses.
    loss = jnp.mean(row_loss)

    # ---- accuracy glue (reference uses an external `accuracy(...)` helper) ----
    # The reference hard-assumes count == 2 (n = 2*batch_size).  The in-kernel
    # argmax excludes the diagonal, so we compare against labels expressed in
    # original column indices (equivalent to the reference's diag-removal math).
    if count == 2:
        label = jnp.concatenate([jnp.arange(B, 2 * B), jnp.arange(0, B)]).astype(jnp.int32)
        # TODO(synk): reference `accuracy(..., topk=(1,2))` is undefined in the
        # snippet; we compute the standard top-1 precision (percentage).
        prec1 = 100.0 * jnp.mean((pred[0] == label).astype(jnp.float32))
    else:
        prec1 = jnp.float32(jnp.nan)

    return loss, prec1


if __name__ == "__main__":
    key = jax.random.PRNGKey(0)
    batch_size, count, dim = 8, 2, 32
    features = jax.random.normal(key, (batch_size, count, dim), dtype=jnp.float32)

    loss, prec1 = loss_function_forward(features, init_w=10.0, init_b=-5.0)
    jax.block_until_ready((loss, prec1))
    print("KERNEL_OK")
</pallas_src>

<mosaic_0001>
module attributes {stable_mosaic.version = 11 : i64} {
  func.func @_supcon_kernel(%arg0: i32, %arg1: memref<1x2xf32, #tpu.memory_space<smem>>, %arg2: memref<16x32xf32, #tpu.memory_space<vmem>>, %arg3: memref<16x32xf32, #tpu.memory_space<vmem>>, %arg4: memref<1x16xf32, #tpu.memory_space<vmem>>, %arg5: memref<1x16xi32, #tpu.memory_space<vmem>>) attributes {dimension_semantics = [#tpu.dimension_semantics<parallel>], iteration_bounds = array<i64: 1>, scalar_prefetch = 0 : i64, scratch_operands = 0 : i64, tpu.core_type = #tpu.core_type<tc>, window_params = [{transform_indices = @transform_0, window_bounds = array<i64: 1, 2>}, {transform_indices = @transform_1, window_bounds = array<i64: 16, 32>}, {pipeline_mode = #tpu.pipeline_mode<synchronous>, transform_indices = @transform_2, window_bounds = array<i64: 16, 32>}, {transform_indices = @transform_3, window_bounds = array<i64: 1, 16>}, {transform_indices = @transform_4, window_bounds = array<i64: 1, 16>}]} {
    %c0 = arith.constant 0 : index
    %c0_0 = arith.constant 0 : index
    %0 = memref.load %arg1[%c0, %c0_0] : memref<1x2xf32, #tpu.memory_space<smem>>
    %c0_1 = arith.constant 0 : index
    %c1 = arith.constant 1 : index
    %1 = memref.load %arg1[%c0_1, %c1] : memref<1x2xf32, #tpu.memory_space<smem>>
    %c0_2 = arith.constant 0 : index
    %c0_3 = arith.constant 0 : index
    %2 = vector.load %arg2[%c0_2, %c0_3] : memref<16x32xf32, #tpu.memory_space<vmem>>, vector<16x32xf32>
    %c0_4 = arith.constant 0 : index
    %c0_5 = arith.constant 0 : index
    %3 = vector.load %arg3[%c0_4, %c0_5] : memref<16x32xf32, #tpu.memory_space<vmem>>, vector<16x32xf32>
    %4 = arith.mulf %2, %2 : vector<16x32xf32>
    %cst = arith.constant dense<0.000000e+00> : vector<16xf32>
    %5 = vector.multi_reduction <add>, %4, %cst [1] : vector<16x32xf32> to vector<16xf32>
    %6 = vector.shape_cast %5 : vector<16xf32> to vector<16x1xf32>
    %cst_6 = arith.constant 1.000000e-16 : f32
    %7 = vector.broadcast %cst_6 : f32 to vector<16x1xf32>
    %8 = arith.maximumf %6, %7 : vector<16x1xf32>
    %9 = math.rsqrt %8 : vector<16x1xf32>
    %10 = vector.broadcast %9 : vector<16x1xf32> to vector<16x32xf32>
    %11 = arith.mulf %2, %10 : vector<16x32xf32>
    %12 = arith.mulf %3, %3 : vector<16x32xf32>
    %cst_7 = arith.constant dense<0.000000e+00> : vector<16xf32>
    %13 = vector.multi_reduction <add>, %12, %cst_7 [1] : vector<16x32xf32> to vector<16xf32>
    %14 = vector.shape_cast %13 : vector<16xf32> to vector<16x1xf32>
    %cst_8 = arith.constant 1.000000e-16 : f32
    %15 = vector.broadcast %cst_8 : f32 to vector<16x1xf32>
    %16 = arith.maximumf %14, %15 : vector<16x1xf32>
    %17 = math.rsqrt %16 : vector<16x1xf32>
    %18 = vector.broadcast %17 : vector<16x1xf32> to vector<16x32xf32>
    %19 = arith.mulf %3, %18 : vector<16x32xf32>
    %cst_9 = arith.constant dense<0.000000e+00> : vector<16x16xf32>
    %20 = tpu.matmul %11, %19, %cst_9 {dimension_numbers = #tpu.dot_dimension_numbers<[1], [1], [0], [0], [0, 0, 1, 0], [], []>} : vector<16x32xf32>, vector<16x32xf32>, vector<16x16xf32> -> vector<16x16xf32>
    %21 = vector.broadcast %0 : f32 to vector<16x16xf32>
    %22 = arith.mulf %20, %21 : vector<16x16xf32>
    %23 = vector.broadcast %1 : f32 to vector<16x16xf32>
    %24 = arith.addf %22, %23 : vector<16x16xf32>
    %cst_10 = arith.constant dense<0xFF800000> : vector<16xf32>
    %25 = vector.multi_reduction <maximumf>, %24, %cst_10 [1] : vector<16x16xf32> to vector<16xf32>
    %26 = vector.shape_cast %25 : vector<16xf32> to vector<16x1xf32>
    %27 = vector.broadcast %26 : vector<16x1xf32> to vector<16x16xf32>
    %28 = arith.subf %24, %27 : vector<16x16xf32>
    %29 = math.exp %28 : vector<16x16xf32>
    %30 = arith.addf %0, %1 : f32
    %31 = vector.broadcast %30 : f32 to vector<16x1xf32>
    %32 = arith.subf %31, %26 : vector<16x1xf32>
    %cst_11 = arith.constant dense<0.000000e+00> : vector<16xf32>
    %33 = vector.multi_reduction <add>, %29, %cst_11 [1] : vector<16x16xf32> to vector<16xf32>
    %34 = vector.shape_cast %33 : vector<16xf32> to vector<16x1xf32>
    %35 = math.exp %32 : vector<16x1xf32>
    %36 = arith.subf %34, %35 : vector<16x1xf32>
    %c16_i32 = arith.constant 16 : i32
    %37 = arith.muli %arg0, %c16_i32 : i32
    %38 = tpu.iota {dimensions = array<i32: 0>} : vector<16x1xi32>
    %39 = vector.broadcast %37 : i32 to vector<16x1xi32>
    %40 = arith.addi %39, %38 : vector<16x1xi32>
    %41 = tpu.iota {dimensions = array<i32: 1>} : vector<1x16xi32>
    %c8_i32 = arith.constant 8 : i32
    %c0_i32 = arith.constant 0 : i32
    %42 = arith.cmpi eq, %c8_i32, %c0_i32 : i32
    %c1_i32 = arith.constant 1 : i32
    %43 = arith.select %42, %c1_i32, %c8_i32 : i32
    %44 = vector.broadcast %43 : i32 to vector<16x1xi32>
    %45 = arith.remsi %40, %44 : vector<16x1xi32>
    %c0_i32_12 = arith.constant 0 : i32
    %46 = vector.broadcast %c0_i32_12 : i32 to vector<16x1xi32>
    %47 = arith.cmpi ne, %45, %46 : vector<16x1xi32>
    %c0_i32_13 = arith.constant 0 : i32
    %48 = vector.broadcast %c0_i32_13 : i32 to vector<16x1xi32>
    %49 = arith.cmpi slt, %45, %48 : vector<16x1xi32>
    %c0_i32_14 = arith.constant 0 : i32
    %50 = arith.cmpi slt, %43, %c0_i32_14 : i32
    %51 = vector.broadcast %50 : i1 to vector<16x1xi1>
    %52 = vector.broadcast %51 : vector<16x1xi1> to vector<16x1xi1>
    %53 = arith.xori %49, %52 : vector<16x1xi1>
    %54 = arith.andi %53, %47 : vector<16x1xi1>
    %55 = vector.broadcast %43 : i32 to vector<16x1xi32>
    %56 = arith.addi %45, %55 : vector<16x1xi32>
    %57 = arith.select %54, %56, %45 : vector<16x1xi1>, vector<16x1xi32>
    %c8_i32_15 = arith.constant 8 : i32
    %c0_i32_16 = arith.constant 0 : i32
    %58 = arith.cmpi eq, %c8_i32_15, %c0_i32_16 : i32
    %c1_i32_17 = arith.constant 1 : i32
    %59 = arith.select %58, %c1_i32_17, %c8_i32_15 : i32
    %60 = vector.broadcast %59 : i32 to vector<1x16xi32>
    %61 = arith.remsi %41, %60 : vector<1x16xi32>
    %c0_i32_18 = arith.constant 0 : i32
    %62 = vector.broadcast %c0_i32_18 : i32 to vector<1x16xi32>
    %63 = arith.cmpi ne, %61, %62 : vector<1x16xi32>
    %c0_i32_19 = arith.constant 0 : i32
    %64 = vector.broadcast %c0_i32_19 : i32 to vector<1x16xi32>
    %65 = arith.cmpi slt, %61, %64 : vector<1x16xi32>
    %c0_i32_20 = arith.constant 0 : i32
    %66 = arith.cmpi slt, %59, %c0_i32_20 : i32
    %67 = vector.broadcast %66 : i1 to vector<1x16xi1>
    %68 = vector.broadcast %67 : vector<1x16xi1> to vector<1x16xi1>
    %69 = arith.xori %65, %68 : vector<1x16xi1>
    %70 = arith.andi %69, %63 : vector<1x16xi1>
    %71 = vector.broadcast %59 : i32 to vector<1x16xi32>
    %72 = arith.addi %61, %71 : vector<1x16xi32>
    %73 = arith.select %70, %72, %61 : vector<1x16xi1>, vector<1x16xi32>
    %74 = vector.broadcast %57 : vector<16x1xi32> to vector<16x16xi32>
    %75 = vector.broadcast %73 : vector<1x16xi32> to vector<16x16xi32>
    %76 = arith.cmpi eq, %74, %75 : vector<16x16xi32>
    %cst_21 = arith.constant 0.000000e+00 : f32
    %77 = vector.broadcast %cst_21 : f32 to vector<16x16xf32>
    %78 = arith.select %76, %28, %77 : vector<16x16xi1>, vector<16x16xf32>
    %cst_22 = arith.constant dense<0.000000e+00> : vector<16xf32>
    %79 = vector.multi_reduction <add>, %78, %cst_22 [1] : vector<16x16xf32> to vector<16xf32>
    %80 = vector.shape_cast %79 : vector<16xf32> to vector<16x1xf32>
    %81 = arith.subf %80, %32 : vector<16x1xf32>
    %82 = math.log %36 : vector<16x1xf32>
    %cst_23 = arith.constant 1.000000e+00 : f32
    %83 = vector.broadcast %cst_23 : f32 to vector<16x1xf32>
    %84 = arith.mulf %81, %83 : vector<16x1xf32>
    %85 = arith.subf %82, %84 : vector<16x1xf32>
    %86 = vector.shape_cast %85 : vector<16x1xf32> to vector<16xf32>
    %c0_24 = arith.constant 0 : index
    %c0_25 = arith.constant 0 : index
    %87 = vector.load %arg4[%c0_24, %c0_25] : memref<1x16xf32, #tpu.memory_space<vmem>>, vector<1x16xf32>
    %88 = vector.shape_cast %87 : vector<1x16xf32> to vector<16xf32>
    %89 = vector.shape_cast %86 : vector<16xf32> to vector<1x16xf32>
    tpu.vector_store %arg4[%c0_24, %c0_25], %89 {strides = array<i32>} : memref<1x16xf32, #tpu.memory_space<vmem>>, vector<1x16xf32>,
    %90 = vector.broadcast %40 : vector<16x1xi32> to vector<16x16xi32>
    %91 = vector.broadcast %41 : vector<1x16xi32> to vector<16x16xi32>
    %92 = arith.cmpi eq, %90, %91 : vector<16x16xi32>
    %cst_26 = arith.constant 0xFF800000 : f32
    %93 = vector.broadcast %cst_26 : f32 to vector<16x16xf32>
    %94 = arith.select %92, %93, %28 : vector<16x16xi1>, vector<16x16xf32>
    %cst_27 = arith.constant dense<0xFF800000> : vector<16xf32>
    %95 = vector.multi_reduction <maximumf>, %94, %cst_27 [1] : vector<16x16xf32> to vector<16xf32>
    %96 = vector.shape_cast %95 : vector<16xf32> to vector<16x1xf32>
    %97 = vector.broadcast %96 : vector<16x1xf32> to vector<16x16xf32>
    %98 = arith.cmpf oeq, %94, %97 : vector<16x16xf32>
    %c16_i32_28 = arith.constant 16 : i32
    %99 = vector.shape_cast %41 : vector<1x16xi32> to vector<1x16xi32>
    %100 = vector.broadcast %99 : vector<1x16xi32> to vector<16x16xi32>
    %101 = vector.broadcast %c16_i32_28 : i32 to vector<16x16xi32>
    %102 = arith.select %98, %100, %101 : vector<16x16xi1>, vector<16x16xi32>
    %cst_29 = arith.constant dense<2147483647> : vector<16xi32>
    %103 = vector.multi_reduction <minsi>, %102, %cst_29 [1] : vector<16x16xi32> to vector<16xi32>
    %c0_30 = arith.constant 0 : index
    %c0_31 = arith.constant 0 : index
    %104 = vector.load %arg5[%c0_30, %c0_31] : memref<1x16xi32, #tpu.memory_space<vmem>>, vector<1x16xi32>
    %105 = vector.shape_cast %104 : vector<1x16xi32> to vector<16xi32>
    %106 = vector.shape_cast %103 : vector<16xi32> to vector<1x16xi32>
    tpu.vector_store %arg5[%c0_30, %c0_31], %106 {strides = array<i32>} : memref<1x16xi32, #tpu.memory_space<vmem>>, vector<1x16xi32>,
    return
  }
  func.func @transform_0(%arg0: i32) -> (i32, i32) {
    %c0_i32 = arith.constant 0 : i32
    %c0_i32_0 = arith.constant 0 : i32
    %c0_i32_1 = arith.constant 0 : i32
    return %c0_i32, %c0_i32_0 : i32, i32
  }
  func.func @transform_1(%arg0: i32) -> (i32, i32) {
    %c0_i32 = arith.constant 0 : i32
    %c0_i32_0 = arith.constant 0 : i32
    return %arg0, %c0_i32 : i32, i32
  }
  func.func @transform_2(%arg0: i32) -> (i32, i32) {
    %c0_i32 = arith.constant 0 : i32
    %c0_i32_0 = arith.constant 0 : i32
    %c0_i32_1 = arith.constant 0 : i32
    return %c0_i32, %c0_i32_0 : i32, i32
  }
  func.func @transform_3(%arg0: i32) -> (i32, i32) {
    %c0_i32 = arith.constant 0 : i32
    %c0_i32_0 = arith.constant 0 : i32
    return %c0_i32, %arg0 : i32, i32
  }
  func.func @transform_4(%arg0: i32) -> (i32, i32) {
    %c0_i32 = arith.constant 0 : i32
    %c0_i32_0 = arith.constant 0 : i32
    return %c0_i32, %arg0 : i32, i32
  }
}

</mosaic_0001>

<bundles_post_ra>
// kernel: tpu_custom_call.1
= control target key start
LH: loop header
LB: loop body
LE: loop exit
PB: predicated region body
PF: predicated region fallthrough
CT: control target
= control target key end

     0   :  { %10 = vsyncpa [#allocation5], 0  ;;  %s622_s0 = inlined_call_operand.hbm [shape: f32[1,2], index: 0, kind: input, shape index: {}]   ;;  %s623_s1 = inlined_call_operand.hbm [shape: f32[16,32], index: 1, kind: input, shape index: {}]   ;;  %s624_s2 = inlined_call_operand.hbm [shape: f32[16,32], index: 2, kind: input, shape index: {}]   ;;  %s625_s3 = inlined_call_operand.hbm [shape: f32[1,16], index: 3, kind: output, shape index: {0}]   ;;  %s626_s4 = inlined_call_operand.hbm [shape: s32[1,16], index: 4, kind: output, shape index: {1}]  }
   0x1   :  { %11 = vsyncpa [#allocation3], 0 }
   0x2   :  { %12 = vsyncpa [#allocation8], 0 }
   0x3   :  { %13 = vsyncpa [#allocation4], 0 }
   0x4   :  { %14 = vsyncpa [#allocation11], 0  ;;  %s20_s17 = sshll.u32 %s622_s0, 4  ;;  %s28_s20 = sshll.u32 %s623_s1, 4  ;;  %s21_s17 = int_to_ptr.hbm [resolvable:$true] %s20_s17  ;;  %s29_s20 = int_to_ptr.hbm [resolvable:$true] %s28_s20 }
   0x5   :  { %s512_s21 = smov [#allocation2]   ;;  %s513_s22 = smov [#allocation6]  }
   0x6   :  { %23 = dma.hbm_to_smem %s21_s17, 16, %s512_s21, [#allocation5]  }
   0x7   :  { %s30_s23 = sshll.u32 %s513_s22, 4  ;;  %s514_s24 = smov 128   ;;  %s31_s23 = int_to_ptr.vmem [resolvable:$true] %s30_s23 }
   0x8   :  { %s515_s25 = smov 8   ;;  %s41_s28 = sshll.u32 %s624_s2, 4  ;;  %s42_s28 = int_to_ptr.hbm [resolvable:$true] %s41_s28 }
   0x9   :  { %36 = dma.hbm_to_vmem [thread:$0]  %s29_s20, 256, %s31_s23, [#allocation3], %s514_s24, %s514_s24, %s515_s25  }
   0xa   :  { %s516_s0 = smov [#allocation7]  }
   0xb   :  { %s43_s29 = sshll.u32 %s516_s0, 4  ;;  %s44_s29 = int_to_ptr.vmem [resolvable:$true] %s43_s29 }
   0xc   :  { %49 = dma.hbm_to_vmem [thread:$0]  %s42_s28, 256, %s44_s29, [#allocation8], %s514_s24, %s514_s24, %s515_s25  }
   0xd   :  { %502 = dma.done.wait [#allocation5], 16  }
   0xe   :  { %503 = vsyncadd [#allocation5], 4294967280 }
   0xf   :  { %504 = dma.done.wait [#allocation3], 256  }
  0x10   :  { %505 = vsyncadd [#allocation3], 4294967040 }
  0x11   :  { %506 = dma.done.wait [#allocation8], 256  }
  0x12   :  { %507 = vsyncadd [#allocation8], 4294967040 }
  0x13   :  { %62 = sfence }
  0x14   :  { %v68_v0 = vld [vmem:[#allocation7 + $0x8] sm:$0xff]  ;;  %vm71_vm0 = vcmask 261120   ;;  %v553_v1 = vld [vmem:[#allocation6] sm:$0xff]  ;;  %v557_v4 = vld [vmem:[#allocation7] sm:$0xff]  ;;  %s578_s1 = sld [smem:[#allocation2]]  ;;  %vm175_vm13 = vcmask 130048   ;;  %v205_v62 = vlaneseq }
  0x15   :  { %v103_v2 = vmul.f32 %v68_v0, %v68_v0  ;;  %v69_v3 = vmul.f32 %v553_v1, %v553_v1  ;;  %v559_v5 = vld [vmem:[#allocation6 + $0x8] sm:$0xff]  ;;  %v102_v8 = vmul.f32 %v557_v4, %v557_v4  ;;  %s580_s2 = sld [smem:[#allocation2 + $0x1]]  ;;  %s517_s5 = smov [#allocation9]  }
  0x16   :  { %v70_v9 = vmul.f32 %v559_v5, %v559_v5  ;;  %v206_v63 = vshrl.u32 %v205_v62, 7  ;;  %s330_s6 = sshll.u32 %s517_s5, 4  ;;  %s332_s9 = sshll.u32 %s625_s3, 4  ;;  %s331_s6 = int_to_ptr.vmem [resolvable:$true] %s330_s6  ;;  %s333_s9 = int_to_ptr.hbm [resolvable:$true] %s332_s9 }
  0x17   :  { %v107_v6 = vsel %vm71_vm0, %v103_v2, 0.0  ;;  %v72_v7 = vsel %vm71_vm0, %v69_v3, 0.0  ;;  %v104_v10 = vsel %vm71_vm0, %v102_v8, 0.0  ;;  %s518_s3 = smov [#allocation10]   ;;  %s343_s13 = sshll.u32 %s626_s4, 4  ;;  %s344_s13 = int_to_ptr.hbm [resolvable:$true] %s343_s13 }
  0x18   :  { %108 = vadd.xlane.f32.xlu0 %v107_v6  ;;  %73 = vadd.xlane.f32.xlu1 %v72_v7  ;;  %v75_v11 = vsel %vm71_vm0, %v70_v9, 0.0  ;;  %v217_v2 = vand.u32 7, %v206_v63  ;;  %v207_v9 = vadd.s32 8, %v206_v63  ;;  %s341_s10 = sshll.u32 %s518_s3, 4  ;;  %s342_s10 = int_to_ptr.vmem [resolvable:$true] %s341_s10 }
  0x1a   :  { %v169_v52 = vstv %s578_s1 }
  0x1b   :  { %v172_v54 = vstv %s580_s2  ;;  %s188_s30 = sadd.f32 %s580_s2, %s578_s1 }
  0x20   :  { %105 = vadd.xlane.f32.xlu0 %v104_v10  ;;  %76 = vadd.xlane.f32.xlu1 %v75_v11 }
  0x8b   :  { %v109_v12 = vpop.xlane.xlu0 %108  ;;  %v74_v13 = vpop.xlane.xlu1 %73 }
  0x8c   :  { %v111_v14 = vmax.f32 %v109_v12, 1e-16  ;;  %v78_v15 = vmax.f32 %v74_v13, 1e-16 }
  0x8e   :  { %374 = vrsqrt.f32 %v111_v14  ;;  %vm128_vm2 = vweird.f32 %v111_v14  ;;  %vm86_vm4 = vweird.f32 %v78_v15 }
  0x8f   :  { %376 = vrsqrt.f32 %v78_v15 }
  0x93   :  { %v106_v16 = vpop.xlane.xlu0 %105  ;;  %v77_v17 = vpop.xlane.xlu1 %76 }
  0x94   :  { %v375_v18 = vpop.eup %374  ;;  %v110_v19 = vmax.f32 %v106_v16, 1e-16  ;;  %v79_v20 = vmax.f32 %v77_v17, 1e-16  ;;  %v224_v16 = vand.u32 7, %v207_v9 }
  0x95   :  { %v377_v21 = vpop.eup %376  ;;  %v123_v22 = vmul.f32 %v375_v18, %v111_v14  ;;  %vm129_vm1 = vweird.f32 %v375_v18 }
  0x96   :  { %v81_v23 = vmul.f32 %v377_v21, %v78_v15  ;;  %378 = vrsqrt.f32 %v110_v19  ;;  %vm130_vm3 = vmor %vm128_vm2, %vm129_vm1  ;;  %vm87_vm5 = vweird.f32 %v377_v21  ;;  %vm96_vm7 = vweird.f32 %v79_v20 }
  0x97   :  { %v124_v24 = vmul.f32 %v375_v18, %v123_v22  ;;  %380 = vrsqrt.f32 %v79_v20  ;;  %vm88_vm9 = vmor %vm86_vm4, %vm87_vm5  ;;  %vm118_vm10 = vweird.f32 %v110_v19 }
  0x98   :  { %v82_v25 = vmul.f32 %v377_v21, %v81_v23 }
  0x99   :  { %v125_v26 = vmul.f32 0.5, %v124_v24 }
  0x9a   :  { %v83_v29 = vmul.f32 0.5, %v82_v25 }
  0x9b   :  { %v126_v27 = vsub.f32 1.5, %v125_v26 }
  0x9c   :  { %v379_v28 = vpop.eup %378  ;;  %v84_v36 = vsub.f32 1.5, %v83_v29 }
  0x9d   :  { %v381_v30 = vpop.eup %380  ;;  %v113_v31 = vmul.f32 %v379_v28, %v110_v19  ;;  %v127_v32 = vmul.f32 %v375_v18, %v126_v27  ;;  %vm119_vm6 = vweird.f32 %v379_v28 }
  0x9e   :  { %v91_v33 = vmul.f32 %v381_v30, %v79_v20  ;;  %vm97_vm8 = vweird.f32 %v381_v30  ;;  %v85_v43 = vmul.f32 %v377_v21, %v84_v36  ;;  %vm120_vm11 = vmor %vm118_vm10, %vm119_vm6  ;;  %vm272_vm6 = vcmask 130112  }
  0x9f   :  { %v114_v34 = vmul.f32 %v379_v28, %v113_v31  ;;  %v131_v35 = vsel %vm130_vm3, %v375_v18, %v127_v32  ;;  %vm98_vm12 = vmor %vm96_vm7, %vm97_vm8  ;;  %vm275_vm7 = vcmask 122880  }
  0xa0   :  { %v92_v37 = vmul.f32 %v381_v30, %v91_v33  ;;  %v133_v38 = vmul.f32 %v131_v35, %v68_v0  ;;  %v89_v48 = vsel %vm88_vm9, %v377_v21, %v85_v43  ;;  %v586_v0 = vand.u32 127, %v205_v62 }
  0xa1   :  { %v115_v39 = vmul.f32 0.5, %v114_v34  ;;  %v100_v50 = vmul.f32 %v89_v48, %v553_v1  ;;  %v189_v34 = vstv %s188_s30 }
  0xa2   :  { %v93_v40 = vmul.f32 0.5, %v92_v37  ;;  %361 = vmatpush.xpose.msk.msra.mxu0 %vm71_vm0, %v133_v38  ;;  %365 = vmatpush.xpose.msk.msra.mxu1 %vm71_vm0, %v133_v38  ;;  %v241_v1 = vand.u32 7, %v586_v0  ;;  %vm277_vm15 = vcmp.eq.s32.totalorder %v206_v63, %v586_v0 }
  0xa3   :  { %v116_v41 = vsub.f32 1.5, %v115_v39 }
  0xa4   :  { %v94_v42 = vsub.f32 1.5, %v93_v40  ;;  %vm589_vm14 = vcmp.eq.s32.totalorder %v217_v2, %v241_v1  ;;  %vm250_vm1 = vcmp.eq.s32.totalorder %v224_v16, %v241_v1 }
  0xa5   :  { %v117_v44 = vmul.f32 %v379_v28, %v116_v41 }
  0xa6   :  { %v95_v45 = vmul.f32 %v381_v30, %v94_v42 }
  0xa7   :  { %v121_v46 = vsel %vm120_vm11, %v379_v28, %v117_v44 }
  0xa8   :  { %v132_v47 = vmul.f32 %v121_v46, %v557_v4  ;;  %v99_v49 = vsel %vm98_vm12, %v381_v30, %v95_v45 }
  0xa9   :  { %v101_v51 = vmul.f32 %v99_v49, %v559_v5 }
  0xaa   :  { %362 = vmatpush.xpose.msk.msra.mxu0 %vm71_vm0, %v132_v47  ;;  %366 = vmatpush.xpose.msk.msra.mxu1 %vm71_vm0, %v132_v47 }
  0xad   :  { %363 = vmatmul.msk.f32.vlgmr.msra.gmra.mxu0 %vm71_vm0, %v100_v50  ;;  %364 = vmatmul.msk.f32.vlgmr.msra.gmra.mxu1 %vm71_vm0, %v101_v51  ;;  %vm278_vm0 = vcmp.eq.s32.totalorder %v207_v9, %v586_v0 }
 0x12a   :  { %v163_v53 = vpop.f32.mrf.mxu0  ;;  %v166_v56 = vpop.f32.mrf.mxu1 }
 0x12b   :  { %v170_v55 = vmul.f32 %v169_v52, %v163_v53  ;;  %v171_v58 = vmul.f32 %v169_v52, %v166_v56 }
 0x12d   :  { %v173_v57 = vadd.f32 %v172_v54, %v170_v55  ;;  %v174_v60 = vadd.f32 %v172_v54, %v171_v58 }
 0x12f   :  { %v176_v59 = vsel %vm175_vm13, %v173_v57, -inf  ;;  %v179_v61 = vsel %vm175_vm13, %v174_v60, -inf }
 0x130   :  { %177 = vmax.xlane.f32.xlu2 %v176_v59 }
 0x138   :  { %180 = vmax.xlane.f32.xlu2 %v179_v61  ;;  %v270_v61 = vadd.s32 4294967288, %v586_v0 }
 0x1a3   :  { %v178_v4 = vpop.xlane.xlu2 %177 }
 0x1a4   :  { %v182_v5 = vsub.f32 %v173_v57, %v178_v4  ;;  %v190_v35 = vsub.f32 %v189_v34, %v178_v4 }
 0x1a6   :  { %v279_v6 = vsel %vm277_vm15, -inf, %v182_v5  ;;  %v251_v7 = vsel %vm589_vm14, %v182_v5, 0.0  ;;  %v184_v10 = vmul.f32 1.442695, %v182_v5  ;;  %v198_v36 = vmul.f32 1.442695, %v190_v35 }
 0x1a7   :  { %v281_v8 = vsel %vm175_vm13, %v279_v6, -inf  ;;  %v253_v33 = vsel %vm175_vm13, %v251_v7, 0.0 }
 0x1a8   :  { %282 = vmax.xlane.f32.xlu0 %v281_v8  ;;  %382 = vpow2.f32 %v184_v10 }
 0x1ab   :  { %v181_v11 = vpop.xlane.xlu2 %180 }
 0x1ac   :  { %v183_v12 = vsub.f32 %v174_v60, %v181_v11  ;;  %v191_v37 = vsub.f32 %v189_v34, %v181_v11 }
 0x1ae   :  { %v280_v13 = vsel %vm278_vm0, -inf, %v183_v12  ;;  %v383_v15 = vpop.eup %382  ;;  %v252_v18 = vsel %vm250_vm1, %v183_v12, 0.0  ;;  %v186_v21 = vmul.f32 1.442695, %v183_v12  ;;  %v200_v39 = vmul.f32 1.442695, %v191_v37 }
 0x1af   :  { %v284_v14 = vsel %vm175_vm13, %v280_v13, -inf  ;;  %v192_v17 = vsel %vm175_vm13, %v383_v15, 0.0  ;;  %v256_v19 = vsel %vm175_vm13, %v252_v18, 0.0 }
 0x1b0   :  { %285 = vmax.xlane.f32.xlu1 %v284_v14  ;;  %384 = vpow2.f32 %v186_v21 }
 0x1b1   :  { %386 = vpow2.f32 %v198_v36 }
 0x1b2   :  { %388 = vpow2.f32 %v200_v39 }
 0x1b6   :  { %v385_v29 = vpop.eup %384 }
 0x1b7   :  { %v195_v32 = vsel %vm175_vm13, %v385_v29, 0.0  ;;  %v387_v44 = vpop.eup %386 }
 0x1b8   :  { %193 = vadd.xlane.f32.xlu1 %v192_v17  ;;  %v389_v47 = vpop.eup %388 }
 0x1c0   :  { %257 = vadd.xlane.f32.xlu1 %v256_v19 }
 0x21b   :  { %v283_v20 = vpop.xlane.xlu0 %282 }
 0x21c   :  { %vm287_vm2 = vcmp.eq.f32.partialorder %v279_v6, %v283_v20 }
 0x21d   :  { %v289_v22 = vsel %vm287_vm2, %v586_v0, 16 }
 0x21e   :  { %v291_v23 = vsel %vm175_vm13, %v289_v22, 2147483647 }
 0x21f   :  { %v293_v24 = vshra.s32 %v291_v23, 16  ;;  %v292_v38 = vand.u32 65535, %v291_v23 }
 0x221   :  { %v295_v25 = vcvt.s32.f32 %v293_v24  ;;  %v294_v41 = vcvt.s32.f32 %v292_v38 }
 0x223   :  { %296 = vmin.xlane.f32.xlu2 %v295_v25  ;;  %v286_v26 = vpop.xlane.xlu1 %285 }
 0x224   :  { %vm288_vm3 = vcmp.eq.f32.partialorder %v280_v13, %v286_v26 }
 0x225   :  { %v290_v27 = vsel %vm288_vm3, %v586_v0, 16 }
 0x226   :  { %v306_v28 = vsel %vm175_vm13, %v290_v27, 2147483647 }
 0x227   :  { %v308_v30 = vshra.s32 %v306_v28, 16  ;;  %v307_v46 = vand.u32 65535, %v306_v28 }
 0x229   :  { %v310_v31 = vcvt.s32.f32 %v308_v30  ;;  %v309_v50 = vcvt.s32.f32 %v307_v46 }
 0x22b   :  { %311 = vmin.xlane.f32.xlu0 %v310_v31  ;;  %196 = vadd.xlane.f32.xlu2 %v195_v32  ;;  %v194_v42 = vpop.xlane.xlu1 %193 }
 0x22c   :  { %v202_v45 = vsub.f32 %v194_v42, %v387_v44 }
 0x22e   :  { %390 = vlog2.f32 %v202_v45 }
 0x233   :  { %254 = vadd.xlane.f32.xlu0 %v253_v33  ;;  %v258_v54 = vpop.xlane.xlu1 %257 }
 0x234   :  { %v391_v53 = vpop.eup %390  ;;  %v260_v59 = vsub.f32 %v258_v54, %v191_v37 }
 0x235   :  { %v262_v57 = vmul.f32 0.6931472, %v391_v53 }
 0x296   :  { %v297_v40 = vpop.xlane.xlu2 %296 }
 0x297   :  { %vm298_vm4 = vcmp.eq.f32.partialorder %v295_v25, %v297_v40  ;;  %v303_v5 = vcvt.f32.s32 %v297_v40 }
 0x298   :  { %v299_v43 = vsel %vm298_vm4, %v294_v41, inf }
 0x299   :  { %300 = vmin.xlane.f32.xlu2 %v299_v43  ;;  %v304_v8 = vshll.u32 %v303_v5, 16 }
 0x29e   :  { %v312_v48 = vpop.xlane.xlu0 %311  ;;  %v197_v49 = vpop.xlane.xlu2 %196 }
 0x29f   :  { %v203_v51 = vsub.f32 %v197_v49, %v389_v47  ;;  %vm313_vm5 = vcmp.eq.f32.partialorder %v310_v31, %v312_v48  ;;  %v318_v6 = vcvt.f32.s32 %v312_v48 }
 0x2a0   :  { %v314_v52 = vsel %vm313_vm5, %v309_v50, inf }
 0x2a1   :  { %392 = vlog2.f32 %v203_v51  ;;  %315 = vmin.xlane.f32.xlu0 %v314_v52  ;;  %v319_v10 = vshll.u32 %v318_v6, 16 }
 0x2a6   :  { %v255_v55 = vpop.xlane.xlu0 %254 }
 0x2a7   :  { %v393_v56 = vpop.eup %392  ;;  %v259_v58 = vsub.f32 %v255_v55, %v190_v35 }
 0x2a8   :  { %v264_v60 = vmul.f32 0.6931472, %v393_v56 }
 0x2a9   :  { %v265_v62 = vsub.f32 %v262_v57, %v259_v58 }
 0x2aa   :  { %v266_v63 = vsub.f32 %v264_v60, %v260_v59 }
 0x2ab   :  { %v269_v1 = vperm.slane %v265_v62, %v586_v0 }
 0x2ac   :  { %v271_v2 = vperm.slane %v266_v63, %v270_v61 }
 0x2ae   :  { %v273_v3 = vsel %vm272_vm6, %v271_v2, %v269_v1 }
 0x2af   :  { %276 = vst.msk [vmem:[#allocation9] sm:$0x1] %vm275_vm7, %v273_v3 }
 0x2b0   :  { %335 = dma.vmem_to_hbm [thread:$0]  %s331_s6, 16, %s333_s9, [#allocation4]  }
 0x30c   :  { %v301_v4 = vpop.xlane.xlu2 %300 }
 0x30d   :  { %v302_v7 = vcvt.f32.s32 %v301_v4 }
 0x30f   :  { %v305_v11 = vadd.s32 %v304_v8, %v302_v7 }
 0x311   :  { %v321_v14 = vperm.slane %v305_v11, %v586_v0 }
 0x314   :  { %v316_v9 = vpop.xlane.xlu0 %315 }
 0x315   :  { %v317_v12 = vcvt.f32.s32 %v316_v9 }
 0x317   :  { %v320_v13 = vadd.s32 %v319_v10, %v317_v12 }
 0x319   :  { %v322_v15 = vperm.slane %v320_v13, %v270_v61 }
 0x31b   :  { %v323_v16 = vsel %vm272_vm6, %v322_v15, %v321_v14 }
 0x31c   :  { %324 = vst.msk [vmem:[#allocation10] sm:$0x1] %vm275_vm7, %v323_v16 }
 0x31d   :  { %346 = dma.vmem_to_hbm [thread:$0]  %s342_s10, 16, %s344_s13, [#allocation11]  }
 0x31e   :  { %508 = dma.done.wait [#allocation4], 16  }
 0x31f   :  { %509 = vsyncadd [#allocation4], 4294967280 }
 0x320   :  { %510 = dma.done.wait [#allocation11], 16  }
 0x321   :  { %511 = vsyncadd [#allocation11], 4294967280 }
 0x322   :  { %355 = vsyncpa [#allocation3], 1 }
 0x323   :  { %356 = vsyncpa [#allocation8], 1 }
 0x324   :  { %357 = vsyncpa [#allocation4], 1 }
 0x325   :  { %358 = vsyncpa [#allocation11], 1 }
 0x326   :  { %359 = vsyncpa [#allocation5], 1 }

</bundles_post_ra>
